<compile_context>
chip_gen: v5e
topology: v5e:2x2
jax: 0.10.0
libtpu: 0.0.40
codegen_flags: <defaults>
</compile_context>

<pallas_src>
import functools

import jax
import jax.numpy as jnp
from jax.experimental import pallas as pl
from jax.experimental.pallas import tpu as pltpu


def _round_up(x, m):
    return (x + m - 1) // m * m


def _fused_mapping_kernel(*refs, n_layers, negative_slope, matmul_dtype):
    # refs = (x_ref, w0, b0, w1, b1, ..., w_{L-1}, b_{L-1}, o_ref)
    #   x_ref : (tb, D0p)    matmul_dtype
    #   w_i   : (Dip, D{i+1}p)  matmul_dtype (pre-transposed, padded)
    #   b_i   : (1,  D{i+1}p)   float32
    #   o_ref : (tb, DLp)    float32
    x_ref = refs[0]
    o_ref = refs[1 + 2 * n_layers]

    h = x_ref[...]
    for i in range(n_layers):
        w_ref = refs[1 + 2 * i]
        b_ref = refs[2 + 2 * i]
        # MXU matmul, f32 accumulate; bias + activation in f32 on the VPU.
        y = jnp.dot(h, w_ref[...], preferred_element_type=jnp.float32)
        y = y + b_ref[...]
        if i < n_layers - 1:
            y = jnp.maximum(y, negative_slope * y)   # LeakyReLU, 0 < slope < 1
            h = y.astype(matmul_dtype)               # feed next MXU pass
        else:
            h = y                                    # last block: Linear only
    o_ref[...] = h.astype(o_ref.dtype)


def prepare_params(params, matmul_dtype=jnp.float32):
    """One-time conversion of PyTorch-layout params to MXU-ready operands.

    params: list of (w, b) with w: (D_out, D_in) f32, b: (D_out,) f32
    Returns list of (w_t_padded, b_padded) with
        w_t_padded: (D_in_pad, D_out_pad) matmul_dtype   (pre-transposed)
        b_padded  : (1, D_out_pad) float32
    Done once outside the forward path (no per-forward transpose / cast).
    """
    prepared = []
    for w, b in params:
        d_out, d_in = w.shape
        d_in_p = _round_up(d_in, 128)
        d_out_p = _round_up(d_out, 128)
        w_t = jnp.zeros((d_in_p, d_out_p), matmul_dtype)
        w_t = w_t.at[:d_in, :d_out].set(w.T.astype(matmul_dtype))
        b_p = jnp.zeros((1, d_out_p), jnp.float32)
        b_p = b_p.at[:, :d_out].set(b.astype(jnp.float32))
        prepared.append((w_t, b_p))
    return prepared


def mapping_model_forward(x, prepared, d_out, *, negative_slope=0.2,
                          matmul_dtype=jnp.float32, block_b=None):
    """Equivalent of mapping_model.forward: all blocks fused in one kernel.

    x:        (B, D_in) float32
    prepared: output of prepare_params (pre-transposed / padded / cast)
    d_out:    true (unpadded) output feature dim
    """
    n_layers = len(prepared)
    B, d_in = x.shape
    d_in_p = prepared[0][0].shape[0]
    d_out_p = prepared[-1][0].shape[1]

    # Sublane-dense batch; tile it so large B can be gridded across cores.
    b_pad = _round_up(B, 8)
    if block_b is None:
        block_b = min(b_pad, 256)   # re-derive vs 64 MiB VMEM if D grows (v7x)
    b_pad = _round_up(b_pad, block_b)

    x_p = jnp.zeros((b_pad, d_in_p), matmul_dtype)
    x_p = x_p.at[:B, :d_in].set(x.astype(matmul_dtype))

    flat_inputs = [x_p]
    in_specs = [pl.BlockSpec((block_b, d_in_p), lambda i: (i, 0))]
    for w_t, b_p in prepared:
        flat_inputs += [w_t, b_p]
        # Full-array weight/bias operands; block index constant across the
        # batch grid -> DMA'd into VMEM once, resident for all batch tiles.
        in_specs += [
            pl.BlockSpec(w_t.shape, lambda i: (0, 0)),
            pl.BlockSpec(b_p.shape, lambda i: (0, 0)),
        ]
    out_specs = pl.BlockSpec((block_b, d_out_p), lambda i: (i, 0))

    kernel = functools.partial(
        _fused_mapping_kernel,
        n_layers=n_layers,
        negative_slope=negative_slope,
        matmul_dtype=matmul_dtype,
    )

    out_p = pl.pallas_call(
        kernel,
        out_shape=jax.ShapeDtypeStruct((b_pad, d_out_p), jnp.float32),
        grid=(b_pad // block_b,),
        in_specs=in_specs,
        out_specs=out_specs,
        compiler_params=pltpu.CompilerParams(
            dimension_semantics=("parallel",)),   # v7x: split batch across TCs
    )(*flat_inputs)

    return out_p[:B, :d_out].astype(x.dtype)


def init_mapping_params(key, d_in, d_hidden, d_out, n_hidden_blocks):
    """Deterministic parameter init mirroring the nn.Linear shapes per block."""
    params = []
    dims = [d_in] + [d_hidden] * n_hidden_blocks + [d_out]
    for i in range(len(dims) - 1):
        key, kw, kb = jax.random.split(key, 3)
        fan_in = dims[i]
        bound = 1.0 / jnp.sqrt(fan_in)
        w = jax.random.uniform(kw, (dims[i + 1], dims[i]), jnp.float32, -bound, bound)
        b = jax.random.uniform(kb, (dims[i + 1],), jnp.float32, -bound, bound)
        params.append((w, b))
    return params


def _reference_forward(x, params, *, negative_slope=0.2):
    n = len(params)
    for i, (w, b) in enumerate(params):
        x = x @ w.T + b
        if i < n - 1:
            x = jnp.where(x >= 0, x, negative_slope * x)
    return x


if __name__ == "__main__":
    key = jax.random.PRNGKey(0)
    B, D_IN, D_HIDDEN, D_OUT = 2, 32, 32, 16

    key, kx = jax.random.split(key)
    x = jax.random.normal(kx, (B, D_IN), jnp.float32)

    params = init_mapping_params(key, D_IN, D_HIDDEN, D_OUT, n_hidden_blocks=3)
    ref = _reference_forward(x, params)

    # --- f32 path (v5e-friendly; exactness check) ----------------------------
    prep_f32 = prepare_params(params, jnp.float32)
    out = mapping_model_forward(x, prep_f32, D_OUT, matmul_dtype=jnp.float32)
    out = jax.block_until_ready(out)
    assert out.shape == (B, D_OUT)
    assert jnp.allclose(out, ref, atol=1e-5, rtol=1e-4), "f32 mismatch vs reference"

    # --- bf16-fed-MXU path (v6e/v7x recipe: bf16 matmul inputs, f32 acc) ------
    prep_bf16 = prepare_params(params, jnp.bfloat16)
    out_bf16 = mapping_model_forward(x, prep_bf16, D_OUT, matmul_dtype=jnp.bfloat16)
    out_bf16 = jax.block_until_ready(out_bf16)
    assert out_bf16.shape == (B, D_OUT)
    assert jnp.allclose(out_bf16, ref, atol=5e-2, rtol=5e-2), "bf16 mismatch vs reference"

    print("KERNEL_OK")
</pallas_src>

<mosaic_0001>
module attributes {stable_mosaic.version = 11 : i64} {
  func.func @_fused_mapping_kernel(%arg0: i32, %arg1: memref<8x128xf32, #tpu.memory_space<vmem>>, %arg2: memref<128x128xf32, #tpu.memory_space<vmem>>, %arg3: memref<1x128xf32, #tpu.memory_space<vmem>>, %arg4: memref<128x128xf32, #tpu.memory_space<vmem>>, %arg5: memref<1x128xf32, #tpu.memory_space<vmem>>, %arg6: memref<128x128xf32, #tpu.memory_space<vmem>>, %arg7: memref<1x128xf32, #tpu.memory_space<vmem>>, %arg8: memref<128x128xf32, #tpu.memory_space<vmem>>, %arg9: memref<1x128xf32, #tpu.memory_space<vmem>>, %arg10: memref<8x128xf32, #tpu.memory_space<vmem>>) attributes {dimension_semantics = [#tpu.dimension_semantics<parallel>], iteration_bounds = array<i64: 1>, scalar_prefetch = 0 : i64, scratch_operands = 0 : i64, tpu.core_type = #tpu.core_type<tc>, window_params = [{transform_indices = @transform_0, window_bounds = array<i64: 8, 128>}, {pipeline_mode = #tpu.pipeline_mode<synchronous>, transform_indices = @transform_1, window_bounds = array<i64: 128, 128>}, {pipeline_mode = #tpu.pipeline_mode<synchronous>, transform_indices = @transform_2, window_bounds = array<i64: 1, 128>}, {pipeline_mode = #tpu.pipeline_mode<synchronous>, transform_indices = @transform_3, window_bounds = array<i64: 128, 128>}, {pipeline_mode = #tpu.pipeline_mode<synchronous>, transform_indices = @transform_4, window_bounds = array<i64: 1, 128>}, {pipeline_mode = #tpu.pipeline_mode<synchronous>, transform_indices = @transform_5, window_bounds = array<i64: 128, 128>}, {pipeline_mode = #tpu.pipeline_mode<synchronous>, transform_indices = @transform_6, window_bounds = array<i64: 1, 128>}, {pipeline_mode = #tpu.pipeline_mode<synchronous>, transform_indices = @transform_7, window_bounds = array<i64: 128, 128>}, {pipeline_mode = #tpu.pipeline_mode<synchronous>, transform_indices = @transform_8, window_bounds = array<i64: 1, 128>}, {transform_indices = @transform_9, window_bounds = array<i64: 8, 128>}]} {
    %c0 = arith.constant 0 : index
    %c0_0 = arith.constant 0 : index
    %0 = vector.load %arg1[%c0, %c0_0] : memref<8x128xf32, #tpu.memory_space<vmem>>, vector<8x128xf32>
    %c0_1 = arith.constant 0 : index
    %c0_2 = arith.constant 0 : index
    %1 = vector.load %arg2[%c0_1, %c0_2] : memref<128x128xf32, #tpu.memory_space<vmem>>, vector<128x128xf32>
    %cst = arith.constant dense<0.000000e+00> : vector<8x128xf32>
    %2 = tpu.matmul %0, %1, %cst {dimension_numbers = #tpu.dot_dimension_numbers<[1], [0], [0], [1], [0, 0, 1, 1], [], []>} : vector<8x128xf32>, vector<128x128xf32>, vector<8x128xf32> -> vector<8x128xf32>
    %c0_3 = arith.constant 0 : index
    %c0_4 = arith.constant 0 : index
    %3 = vector.load %arg3[%c0_3, %c0_4] : memref<1x128xf32, #tpu.memory_space<vmem>>, vector<1x128xf32>
    %4 = vector.broadcast %3 : vector<1x128xf32> to vector<8x128xf32>
    %5 = arith.addf %2, %4 : vector<8x128xf32>
    %cst_5 = arith.constant 2.000000e-01 : f32
    %6 = vector.broadcast %cst_5 : f32 to vector<8x128xf32>
    %7 = arith.mulf %6, %5 : vector<8x128xf32>
    %8 = arith.maximumf %5, %7 : vector<8x128xf32>
    %c0_6 = arith.constant 0 : index
    %c0_7 = arith.constant 0 : index
    %9 = vector.load %arg4[%c0_6, %c0_7] : memref<128x128xf32, #tpu.memory_space<vmem>>, vector<128x128xf32>
    %cst_8 = arith.constant dense<0.000000e+00> : vector<8x128xf32>
    %10 = tpu.matmul %8, %9, %cst_8 {dimension_numbers = #tpu.dot_dimension_numbers<[1], [0], [0], [1], [0, 0, 1, 1], [], []>} : vector<8x128xf32>, vector<128x128xf32>, vector<8x128xf32> -> vector<8x128xf32>
    %c0_9 = arith.constant 0 : index
    %c0_10 = arith.constant 0 : index
    %11 = vector.load %arg5[%c0_9, %c0_10] : memref<1x128xf32, #tpu.memory_space<vmem>>, vector<1x128xf32>
    %12 = vector.broadcast %11 : vector<1x128xf32> to vector<8x128xf32>
    %13 = arith.addf %10, %12 : vector<8x128xf32>
    %cst_11 = arith.constant 2.000000e-01 : f32
    %14 = vector.broadcast %cst_11 : f32 to vector<8x128xf32>
    %15 = arith.mulf %14, %13 : vector<8x128xf32>
    %16 = arith.maximumf %13, %15 : vector<8x128xf32>
    %c0_12 = arith.constant 0 : index
    %c0_13 = arith.constant 0 : index
    %17 = vector.load %arg6[%c0_12, %c0_13] : memref<128x128xf32, #tpu.memory_space<vmem>>, vector<128x128xf32>
    %cst_14 = arith.constant dense<0.000000e+00> : vector<8x128xf32>
    %18 = tpu.matmul %16, %17, %cst_14 {dimension_numbers = #tpu.dot_dimension_numbers<[1], [0], [0], [1], [0, 0, 1, 1], [], []>} : vector<8x128xf32>, vector<128x128xf32>, vector<8x128xf32> -> vector<8x128xf32>
    %c0_15 = arith.constant 0 : index
    %c0_16 = arith.constant 0 : index
    %19 = vector.load %arg7[%c0_15, %c0_16] : memref<1x128xf32, #tpu.memory_space<vmem>>, vector<1x128xf32>
    %20 = vector.broadcast %19 : vector<1x128xf32> to vector<8x128xf32>
    %21 = arith.addf %18, %20 : vector<8x128xf32>
    %cst_17 = arith.constant 2.000000e-01 : f32
    %22 = vector.broadcast %cst_17 : f32 to vector<8x128xf32>
    %23 = arith.mulf %22, %21 : vector<8x128xf32>
    %24 = arith.maximumf %21, %23 : vector<8x128xf32>
    %c0_18 = arith.constant 0 : index
    %c0_19 = arith.constant 0 : index
    %25 = vector.load %arg8[%c0_18, %c0_19] : memref<128x128xf32, #tpu.memory_space<vmem>>, vector<128x128xf32>
    %cst_20 = arith.constant dense<0.000000e+00> : vector<8x128xf32>
    %26 = tpu.matmul %24, %25, %cst_20 {dimension_numbers = #tpu.dot_dimension_numbers<[1], [0], [0], [1], [0, 0, 1, 1], [], []>} : vector<8x128xf32>, vector<128x128xf32>, vector<8x128xf32> -> vector<8x128xf32>
    %c0_21 = arith.constant 0 : index
    %c0_22 = arith.constant 0 : index
    %27 = vector.load %arg9[%c0_21, %c0_22] : memref<1x128xf32, #tpu.memory_space<vmem>>, vector<1x128xf32>
    %28 = vector.broadcast %27 : vector<1x128xf32> to vector<8x128xf32>
    %29 = arith.addf %26, %28 : vector<8x128xf32>
    %c0_23 = arith.constant 0 : index
    %c0_24 = arith.constant 0 : index
    %30 = vector.load %arg10[%c0_23, %c0_24] : memref<8x128xf32, #tpu.memory_space<vmem>>, vector<8x128xf32>
    tpu.vector_store %arg10[%c0_23, %c0_24], %29 {strides = array<i32>} : memref<8x128xf32, #tpu.memory_space<vmem>>, vector<8x128xf32>,
    return
  }
  func.func @transform_0(%arg0: i32) -> (i32, i32) {
    %c0_i32 = arith.constant 0 : i32
    %c0_i32_0 = arith.constant 0 : i32
    return %arg0, %c0_i32 : i32, i32
  }
  func.func @transform_1(%arg0: i32) -> (i32, i32) {
    %c0_i32 = arith.constant 0 : i32
    %c0_i32_0 = arith.constant 0 : i32
    %c0_i32_1 = arith.constant 0 : i32
    return %c0_i32, %c0_i32_0 : i32, i32
  }
  func.func @transform_2(%arg0: i32) -> (i32, i32) {
    %c0_i32 = arith.constant 0 : i32
    %c0_i32_0 = arith.constant 0 : i32
    %c0_i32_1 = arith.constant 0 : i32
    return %c0_i32, %c0_i32_0 : i32, i32
  }
  func.func @transform_3(%arg0: i32) -> (i32, i32) {
    %c0_i32 = arith.constant 0 : i32
    %c0_i32_0 = arith.constant 0 : i32
    %c0_i32_1 = arith.constant 0 : i32
    return %c0_i32, %c0_i32_0 : i32, i32
  }
  func.func @transform_4(%arg0: i32) -> (i32, i32) {
    %c0_i32 = arith.constant 0 : i32
    %c0_i32_0 = arith.constant 0 : i32
    %c0_i32_1 = arith.constant 0 : i32
    return %c0_i32, %c0_i32_0 : i32, i32
  }
  func.func @transform_5(%arg0: i32) -> (i32, i32) {
    %c0_i32 = arith.constant 0 : i32
    %c0_i32_0 = arith.constant 0 : i32
    %c0_i32_1 = arith.constant 0 : i32
    return %c0_i32, %c0_i32_0 : i32, i32
  }
  func.func @transform_6(%arg0: i32) -> (i32, i32) {
    %c0_i32 = arith.constant 0 : i32
    %c0_i32_0 = arith.constant 0 : i32
    %c0_i32_1 = arith.constant 0 : i32
    return %c0_i32, %c0_i32_0 : i32, i32
  }
  func.func @transform_7(%arg0: i32) -> (i32, i32) {
    %c0_i32 = arith.constant 0 : i32
    %c0_i32_0 = arith.constant 0 : i32
    %c0_i32_1 = arith.constant 0 : i32
    return %c0_i32, %c0_i32_0 : i32, i32
  }
  func.func @transform_8(%arg0: i32) -> (i32, i32) {
    %c0_i32 = arith.constant 0 : i32
    %c0_i32_0 = arith.constant 0 : i32
    %c0_i32_1 = arith.constant 0 : i32
    return %c0_i32, %c0_i32_0 : i32, i32
  }
  func.func @transform_9(%arg0: i32) -> (i32, i32) {
    %c0_i32 = arith.constant 0 : i32
    %c0_i32_0 = arith.constant 0 : i32
    return %arg0, %c0_i32 : i32, i32
  }
}

</mosaic_0001>

<bundles_post_ra>
// kernel: tpu_custom_call.1
= control target key start
LH: loop header
LB: loop body
LE: loop exit
PB: predicated region body
PF: predicated region fallthrough
CT: control target
= control target key end

     0   :  { %14 = vsyncpa [#allocation3], 0  ;;  %s548_s0 = inlined_call_operand.hbm [shape: f32[8,128], index: 0, kind: input, shape index: {}]   ;;  %s549_s1 = inlined_call_operand.hbm [shape: f32[128,128], index: 1, kind: input, shape index: {}]   ;;  %s550_s2 = inlined_call_operand.vmem [shape: f32[1,128], index: 2, kind: input, shape index: {}]   ;;  %s551_s3 = inlined_call_operand.hbm [shape: f32[128,128], index: 3, kind: input, shape index: {}]   ;;  %s552_s4 = inlined_call_operand.vmem [shape: f32[1,128], index: 4, kind: input, shape index: {}]   ;;  %s553_s5 = inlined_call_operand.hbm [shape: f32[128,128], index: 5, kind: input, shape index: {}]   ;;  %s554_s6 = inlined_call_operand.vmem [shape: f32[1,128], index: 6, kind: input, shape index: {}]   ;;  %s555_s7 = inlined_call_operand.hbm [shape: f32[128,128], index: 7, kind: input, shape index: {}]   ;;  %s556_s8 = inlined_call_operand.vmem [shape: f32[1,128], index: 8, kind: input, shape index: {}]   ;;  %s557_s9 = inlined_call_operand.hbm [shape: f32[8,128], index: 9, kind: output, shape index: {}]  }
   0x1   :  { %15 = vsyncpa [#allocation6], 0 }
   0x2   :  { %16 = vsyncpa [#allocation9], 0  ;;  %s33_s11 = sshll.u32 %s549_s1, 4  ;;  %s34_s11 = int_to_ptr.hbm [resolvable:$true] %s33_s11 }
   0x3   :  { %17 = vsyncpa [#allocation4], 0  ;;  %s460_s12 = smov [#allocation5]   ;;  %s63_s16 = sshll.u32 %s553_s5, 4  ;;  %s64_s16 = int_to_ptr.hbm [resolvable:$true] %s63_s16 }
   0x4   :  { %s35_s13 = sshll.u32 %s460_s12, 4  ;;  %s461_s17 = smov 128   ;;  %s36_s13 = int_to_ptr.vmem [resolvable:$true] %s35_s13 }
   0x5   :  { %s462_s18 = smov 8   ;;  %s463_s19 = smov [#allocation8]  }
   0x6   :  { %41 = dma.hbm_to_vmem [thread:$0]  %s34_s11, 2048, %s36_s13, [#allocation6], %s461_s17, %s461_s17, %s462_s18  }
   0x7   :  { %s65_s20 = sshll.u32 %s463_s19, 4  ;;  %s23_s23 = sshll.u32 %s548_s0, 4  ;;  %s66_s20 = int_to_ptr.vmem [resolvable:$true] %s65_s20  ;;  %s24_s23 = int_to_ptr.hbm [resolvable:$true] %s23_s23 }
   0x8   :  { %71 = dma.hbm_to_vmem [thread:$0]  %s64_s16, 2048, %s66_s20, [#allocation9], %s461_s17, %s461_s17, %s462_s18  }
   0x9   :  { %s48_s25 = sshll.u32 %s551_s3, 4  ;;  %s464_s26 = smov [#allocation2]   ;;  %s49_s25 = int_to_ptr.hbm [resolvable:$true] %s48_s25 }
   0xa   :  { %s25_s27 = sshll.u32 %s464_s26, 4  ;;  %s465_s5 = smov [#allocation7]   ;;  %s26_s27 = int_to_ptr.vmem [resolvable:$true] %s25_s27 }
   0xb   :  { %28 = dma.hbm_to_vmem [thread:$0]  %s24_s23, 128, %s26_s27, [#allocation3]  }
   0xc   :  { %s50_s28 = sshll.u32 %s465_s5, 4  ;;  %s78_s10 = sshll.u32 %s555_s7, 4  ;;  %s51_s28 = int_to_ptr.vmem [resolvable:$true] %s50_s28  ;;  %s79_s10 = int_to_ptr.hbm [resolvable:$true] %s78_s10 }
   0xd   :  { %56 = dma.hbm_to_vmem [thread:$0]  %s49_s25, 2048, %s51_s28, [#allocation6], %s461_s17, %s461_s17, %s462_s18  }
   0xe   :  { %s466_s0 = smov [#allocation10]  }
   0xf   :  { %s80_s11 = sshll.u32 %s466_s0, 4  ;;  %s81_s11 = int_to_ptr.vmem [resolvable:$true] %s80_s11 }
  0x10   :  { %86 = dma.hbm_to_vmem [thread:$0]  %s79_s10, 2048, %s81_s11, [#allocation9], %s461_s17, %s461_s17, %s462_s18  }
  0x11   :  { %452 = dma.done.wait [#allocation3], 128  }
  0x12   :  { %453 = vsyncadd [#allocation3], 4294967168 }
  0x13   :  { %454 = dma.done.wait [#allocation6], 4096  }
  0x14   :  { %455 = vsyncadd [#allocation6], 4294963200 }
  0x15   :  { %456 = dma.done.wait [#allocation9], 4096  }
  0x16   :  { %457 = vsyncadd [#allocation9], 4294963200  ;;  %v125_v0 = vld [vmem:[#allocation5 + $0x78] sm:$0xff]  ;;  %v124_v1 = vld [vmem:[#allocation5 + $0x70] sm:$0xff]  ;;  %s467_s16 = smov [#allocation11]   ;;  %s284_s20 = sshll.u32 %s557_s9, 4  ;;  %s285_s20 = int_to_ptr.hbm [resolvable:$true] %s284_s20 }
  0x17   :  { %130 = vmatpush.msra.mxu0 %v125_v0  ;;  %v123_v2 = vld [vmem:[#allocation5 + $0x68] sm:$0xff]  ;;  %v122_v3 = vld [vmem:[#allocation5 + $0x60] sm:$0xff]  ;;  %v167_v4 = vld [vmem:[#allocation7 + $0x78] sm:$0xff]  ;;  %s282_s17 = sshll.u32 %s467_s16, 4  ;;  %s283_s17 = int_to_ptr.vmem [resolvable:$true] %s282_s17 }
  0x18   :  { %v121_v5 = vld [vmem:[#allocation5 + $0x58] sm:$0xff]  ;;  %172 = vmatpush.msra.mxu1 %v167_v4  ;;  %v166_v6 = vld [vmem:[#allocation7 + $0x70] sm:$0xff]  ;;  %v165_v7 = vld [vmem:[#allocation7 + $0x68] sm:$0xff] }
  0x19   :  { %131 = vmatpush.msra.mxu0 %v124_v1  ;;  %v120_v8 = vld [vmem:[#allocation5 + $0x50] sm:$0xff]  ;;  %v164_v9 = vld [vmem:[#allocation7 + $0x60] sm:$0xff]  ;;  %v119_v10 = vld [vmem:[#allocation5 + $0x48] sm:$0xff] }
  0x1a   :  { %173 = vmatpush.msra.mxu1 %v166_v6  ;;  %v163_v11 = vld [vmem:[#allocation7 + $0x58] sm:$0xff]  ;;  %v118_v12 = vld [vmem:[#allocation5 + $0x40] sm:$0xff]  ;;  %v162_v13 = vld [vmem:[#allocation7 + $0x50] sm:$0xff] }
  0x1b   :  { %132 = vmatpush.msra.mxu0 %v123_v2  ;;  %v117_v14 = vld [vmem:[#allocation5 + $0x38] sm:$0xff]  ;;  %v161_v15 = vld [vmem:[#allocation7 + $0x48] sm:$0xff]  ;;  %v116_v16 = vld [vmem:[#allocation5 + $0x30] sm:$0xff] }
  0x1c   :  { %174 = vmatpush.msra.mxu1 %v165_v7  ;;  %v160_v17 = vld [vmem:[#allocation7 + $0x40] sm:$0xff]  ;;  %v115_v18 = vld [vmem:[#allocation5 + $0x28] sm:$0xff]  ;;  %v159_v19 = vld [vmem:[#allocation7 + $0x38] sm:$0xff] }
  0x1d   :  { %133 = vmatpush.msra.mxu0 %v122_v3  ;;  %v114_v20 = vld [vmem:[#allocation5 + $0x20] sm:$0xff]  ;;  %v158_v21 = vld [vmem:[#allocation7 + $0x30] sm:$0xff]  ;;  %v113_v22 = vld [vmem:[#allocation5 + $0x18] sm:$0xff] }
  0x1e   :  { %175 = vmatpush.msra.mxu1 %v164_v9  ;;  %v157_v23 = vld [vmem:[#allocation7 + $0x28] sm:$0xff]  ;;  %v112_v24 = vld [vmem:[#allocation5 + $0x10] sm:$0xff]  ;;  %v156_v25 = vld [vmem:[#allocation7 + $0x20] sm:$0xff] }
  0x1f   :  { %134 = vmatpush.msra.mxu0 %v121_v5  ;;  %v111_v26 = vld [vmem:[#allocation5 + $0x8] sm:$0xff]  ;;  %v110_v27 = vld [vmem:[#allocation5] sm:$0xff]  ;;  %v109_v28 = vld [vmem:[#allocation2] sm:$0xff] }
  0x20   :  { %176 = vmatpush.msra.mxu1 %v163_v11  ;;  %v155_v29 = vld [vmem:[#allocation7 + $0x18] sm:$0xff]  ;;  %v154_v30 = vld [vmem:[#allocation7 + $0x10] sm:$0xff]  ;;  %v153_v31 = vld [vmem:[#allocation7 + $0x8] sm:$0xff] }
  0x21   :  { %135 = vmatpush.msra.mxu0 %v120_v8  ;;  %v152_v32 = vld [vmem:[#allocation7] sm:$0xff]  ;;  %v209_v33 = vld [vmem:[#allocation8 + $0x78] sm:$0xff]  ;;  %v208_v34 = vld [vmem:[#allocation8 + $0x70] sm:$0xff] }
  0x22   :  { %177 = vmatpush.msra.mxu1 %v162_v13  ;;  %214 = vmatpush.msra.mxu2 %v209_v33  ;;  %v207_v35 = vld [vmem:[#allocation8 + $0x68] sm:$0xff]  ;;  %v206_v36 = vld [vmem:[#allocation8 + $0x60] sm:$0xff]  ;;  %v205_v37 = vld [vmem:[#allocation8 + $0x58] sm:$0xff] }
  0x23   :  { %136 = vmatpush.msra.mxu0 %v119_v10  ;;  %v204_v38 = vld [vmem:[#allocation8 + $0x50] sm:$0xff]  ;;  %v203_v39 = vld [vmem:[#allocation8 + $0x48] sm:$0xff]  ;;  %v202_v40 = vld [vmem:[#allocation8 + $0x40] sm:$0xff] }
  0x24   :  { %178 = vmatpush.msra.mxu1 %v161_v15  ;;  %215 = vmatpush.msra.mxu2 %v208_v34  ;;  %v201_v41 = vld [vmem:[#allocation8 + $0x38] sm:$0xff]  ;;  %v200_v42 = vld [vmem:[#allocation8 + $0x30] sm:$0xff]  ;;  %v199_v43 = vld [vmem:[#allocation8 + $0x28] sm:$0xff] }
  0x25   :  { %137 = vmatpush.msra.mxu0 %v118_v12  ;;  %v198_v44 = vld [vmem:[#allocation8 + $0x20] sm:$0xff]  ;;  %v304_v45 = vld [vmem:[%s550_s2] ss:$0 sm:$0xff]  ;;  %v196_v51 = vld [vmem:[#allocation8 + $0x10] sm:$0xff] }
  0x26   :  { %179 = vmatpush.msra.mxu1 %v160_v17  ;;  %216 = vmatpush.msra.mxu2 %v207_v35  ;;  %v197_v50 = vld [vmem:[#allocation8 + $0x18] sm:$0xff]  ;;  %v195_v52 = vld [vmem:[#allocation8 + $0x8] sm:$0xff]  ;;  %v194_v53 = vld [vmem:[#allocation8] sm:$0xff] }
  0x27   :  { %138 = vmatpush.msra.mxu0 %v117_v14  ;;  %v251_v54 = vld [vmem:[#allocation10 + $0x78] sm:$0xff]  ;;  %v250_v55 = vld [vmem:[#allocation10 + $0x70] sm:$0xff]  ;;  %v249_v56 = vld [vmem:[#allocation10 + $0x68] sm:$0xff] }
  0x28   :  { %180 = vmatpush.msra.mxu1 %v159_v19  ;;  %217 = vmatpush.msra.mxu2 %v206_v36  ;;  %v248_v57 = vld [vmem:[#allocation10 + $0x60] sm:$0xff]  ;;  %v247_v58 = vld [vmem:[#allocation10 + $0x58] sm:$0xff]  ;;  %v246_v59 = vld [vmem:[#allocation10 + $0x50] sm:$0xff] }
  0x29   :  { %139 = vmatpush.msra.mxu0 %v116_v16  ;;  %256 = vmatpush.msra.mxu3 %v251_v54  ;;  %v245_v60 = vld [vmem:[#allocation10 + $0x48] sm:$0xff]  ;;  %v244_v61 = vld [vmem:[#allocation10 + $0x40] sm:$0xff]  ;;  %v243_v62 = vld [vmem:[#allocation10 + $0x38] sm:$0xff] }
  0x2a   :  { %181 = vmatpush.msra.mxu1 %v158_v21  ;;  %218 = vmatpush.msra.mxu2 %v205_v37  ;;  %v242_v63 = vld [vmem:[#allocation10 + $0x30] sm:$0xff]  ;;  %v241_v0 = vld [vmem:[#allocation10 + $0x28] sm:$0xff]  ;;  %v240_v1 = vld [vmem:[#allocation10 + $0x20] sm:$0xff] }
  0x2b   :  { %140 = vmatpush.msra.mxu0 %v115_v18  ;;  %257 = vmatpush.msra.mxu3 %v250_v55  ;;  %v305_v2 = vld [vmem:[%s552_s4] ss:$0 sm:$0xff]  ;;  %v238_v8 = vld [vmem:[#allocation10 + $0x10] sm:$0xff]  ;;  %v237_v9 = vld [vmem:[#allocation10 + $0x8] sm:$0xff] }
  0x2c   :  { %182 = vmatpush.msra.mxu1 %v157_v23  ;;  %219 = vmatpush.msra.mxu2 %v204_v38  ;;  %v239_v7 = vld [vmem:[#allocation10 + $0x18] sm:$0xff]  ;;  %v236_v10 = vld [vmem:[#allocation10] sm:$0xff] }
  0x2d   :  { %141 = vmatpush.msra.mxu0 %v114_v20  ;;  %258 = vmatpush.msra.mxu3 %v249_v56  ;;  %v306_v11 = vld [vmem:[%s554_s6] ss:$0 sm:$0xff] }
  0x2e   :  { %183 = vmatpush.msra.mxu1 %v156_v25  ;;  %220 = vmatpush.msra.mxu2 %v203_v39  ;;  %v307_v16 = vld [vmem:[%s556_s8] ss:$0 sm:$0xff] }
  0x2f   :  { %142 = vmatpush.msra.mxu0 %v113_v22  ;;  %259 = vmatpush.msra.mxu3 %v248_v57 }
  0x30   :  { %184 = vmatpush.msra.mxu1 %v155_v29  ;;  %221 = vmatpush.msra.mxu2 %v202_v40 }
  0x31   :  { %143 = vmatpush.msra.mxu0 %v112_v24  ;;  %260 = vmatpush.msra.mxu3 %v247_v58 }
  0x32   :  { %185 = vmatpush.msra.mxu1 %v154_v30  ;;  %222 = vmatpush.msra.mxu2 %v201_v41 }
  0x33   :  { %144 = vmatpush.msra.mxu0 %v111_v26  ;;  %261 = vmatpush.msra.mxu3 %v246_v59 }
  0x34   :  { %186 = vmatpush.msra.mxu1 %v153_v31  ;;  %223 = vmatpush.msra.mxu2 %v200_v42 }
  0x35   :  { %145 = vmatpush.msra.mxu0 %v110_v27  ;;  %262 = vmatpush.msra.mxu3 %v245_v60 }
  0x36   :  { %146 = vmatmul.f32.vlgmr.msra.gmra.mxu0 %v109_v28  ;;  %187 = vmatpush.msra.mxu1 %v152_v32 }
  0x37   :  { %224 = vmatpush.msra.mxu2 %v199_v43  ;;  %263 = vmatpush.msra.mxu3 %v244_v61 }
  0x39   :  { %225 = vmatpush.msra.mxu2 %v198_v44  ;;  %264 = vmatpush.msra.mxu3 %v243_v62 }
  0x3b   :  { %226 = vmatpush.msra.mxu2 %v197_v50  ;;  %265 = vmatpush.msra.mxu3 %v242_v63 }
  0x3d   :  { %227 = vmatpush.msra.mxu2 %v196_v51  ;;  %266 = vmatpush.msra.mxu3 %v241_v0 }
  0x3f   :  { %228 = vmatpush.msra.mxu2 %v195_v52  ;;  %267 = vmatpush.msra.mxu3 %v240_v1 }
  0x41   :  { %229 = vmatpush.msra.mxu2 %v194_v53  ;;  %268 = vmatpush.msra.mxu3 %v239_v7 }
  0x43   :  { %269 = vmatpush.msra.mxu3 %v238_v8 }
  0x45   :  { %270 = vmatpush.msra.mxu3 %v237_v9 }
  0x47   :  { %271 = vmatpush.msra.mxu3 %v236_v10 }
  0xb3   :  { %v147_v46 = vpop.f32.mrf.mxu0 }
  0xb4   :  { %v148_v47 = vadd.f32 %v304_v45, %v147_v46 }
  0xb6   :  { %v150_v48 = vmul.f32 0.2, %v148_v47 }
  0xb8   :  { %v151_v49 = vmax.f32 %v148_v47, %v150_v48 }
  0xba   :  { %188 = vmatmul.f32.vlgmr.msra.gmra.mxu1 %v151_v49 }
 0x137   :  { %v189_v3 = vpop.f32.mrf.mxu1 }
 0x138   :  { %v190_v4 = vadd.f32 %v305_v2, %v189_v3 }
 0x13a   :  { %v192_v5 = vmul.f32 0.2, %v190_v4 }
 0x13c   :  { %v193_v6 = vmax.f32 %v190_v4, %v192_v5 }
 0x13e   :  { %230 = vmatmul.f32.vlgmr.msra.gmra.mxu2 %v193_v6 }
 0x1c1   :  { %v231_v12 = vpop.f32.mrf.mxu2 }
 0x1c2   :  { %v232_v13 = vadd.f32 %v306_v11, %v231_v12 }
 0x1c4   :  { %v234_v14 = vmul.f32 0.2, %v232_v13 }
 0x1c6   :  { %v235_v15 = vmax.f32 %v232_v13, %v234_v14 }
 0x1c8   :  { %272 = vmatmul.f32.vlgmr.msra.gmra.mxu3 %v235_v15 }
 0x24b   :  { %v273_v17 = vpop.f32.mrf.mxu3 }
 0x24c   :  { %v274_v18 = vadd.f32 %v307_v16, %v273_v17 }
 0x24e   :  { %276 = vst [vmem:[#allocation11] sm:$0xff] %v274_v18 }
 0x24f   :  { %287 = dma.vmem_to_hbm [thread:$0]  %s283_s17, 128, %s285_s20, [#allocation4]  }
 0x250   :  { %458 = dma.done.wait [#allocation4], 128  }
 0x251   :  { %459 = vsyncadd [#allocation4], 4294967168 }
 0x252   :  { %292 = vsyncpa [#allocation3], 1 }
 0x253   :  { %293 = vsyncpa [#allocation6], 1 }
 0x254   :  { %294 = vsyncpa [#allocation9], 1 }
 0x255   :  { %295 = vsyncpa [#allocation4], 1 }

</bundles_post_ra>
